<compile_context>
chip_gen: v6e
topology: v6e:2x2x1
jax: 0.10.0
libtpu: 0.0.40
codegen_flags: <defaults>
</compile_context>

<pallas_src>
import functools

import jax
import jax.numpy as jnp
from jax.experimental import pallas as pl
from jax.experimental.pallas import tpu as pltpu

LANE = 128  # TPU vreg lane width


def _round_up(x, m):
    return ((x + m - 1) // m) * m


def _head_kernel(q_ref, emb_ref, out_ref, *, num_cls, proto_per_cls):
    """One M-tile per grid step.

    q_ref   : [TM, D]     VMEM  (rows = flattened batch*query)
    emb_ref : [D, 128]    VMEM  (grid-invariant; column p*C + c = emb[c, p, :],
                                 columns C*P..127 are zero)
    out_ref : [TM, C]     VMEM
    """
    x = q_ref[...]
    e = emb_ref[...]

    # Single fused MXU pass over all classes*prototypes (<= 128 columns),
    # f32 accumulation regardless of operand dtype.
    sim = jnp.dot(x, e, preferred_element_type=jnp.float32)      # [TM, 128]

    # Segmented max over the P prototypes of each class: (P-1) static,
    # contiguous lane slices (a single XLU rotate each) + VPU vmax.
    # No reshape / cross-tile relayout.
    logits = sim[:, 0:num_cls]                                   # [TM, C]
    for p in range(1, proto_per_cls):
        logits = jnp.maximum(logits, sim[:, p * num_cls:(p + 1) * num_cls])

    out_ref[...] = logits.astype(out_ref.dtype)


def prepare_class_embedding_slab(class_embeddings, compute_dtype=jnp.bfloat16):
    """[C, P, D] parameter -> [D, LANE] slab.  Call once per parameter update
    (hoisted out of the per-forward path)."""
    C, P, D = class_embeddings.shape
    # TODO(synk): tile classes across multiple 128-lane groups when C*P > 128.
    assert C * P <= LANE, "slab layout assumes (num_classes+1)*prototypes_per_class <= 128"
    # column index = p*C + c  holds class_embeddings[c, p, :]
    slab = jnp.transpose(class_embeddings, (2, 1, 0)).reshape(D, P * C)
    slab = jnp.pad(slab, ((0, 0), (0, LANE - P * C)))
    if compute_dtype is not None:
        slab = slab.astype(compute_dtype)
    return slab


def codebook_head7_apply(
    query_features,
    emb_slab,
    num_classes_p1,
    prototypes_per_class,
    *,
    tile_m=2048,
    compute_dtype=jnp.bfloat16,
):
    """
    query_features : [B, Q, D] float32
    emb_slab       : [D, 128]  (from prepare_class_embedding_slab)
    returns logits : [B, Q, num_classes_p1] float32
    """
    B, Q, D = query_features.shape
    De, lane = emb_slab.shape
    assert De == D and lane == LANE
    C = num_classes_p1
    P = prototypes_per_class

    # Collapse batch * query into one M axis.  No padding: the grid uses cdiv
    # and the boundary tile's out-of-range rows are clipped on store.
    M = B * Q
    q_itemsize = 4 if compute_dtype is None else jnp.dtype(compute_dtype).itemsize
    sublane = 8 * max(1, 4 // q_itemsize)          # 8 for f32, 16 for bf16
    tm = min(tile_m, _round_up(M, sublane))
    grid = (pl.cdiv(M, tm),)

    q2 = query_features.reshape(M, D)
    if compute_dtype is not None:
        # HBM-side cast: halves the q-stream DMA bytes; fuses with the
        # producer of query_features when the whole model is jitted.
        q2 = q2.astype(compute_dtype)

    kernel = functools.partial(_head_kernel, num_cls=C, proto_per_cls=P)

    cost = pl.CostEstimate(
        flops=2 * M * D * C * P,
        transcendentals=0,
        bytes_accessed=(
            M * D * q2.dtype.itemsize
            + D * LANE * emb_slab.dtype.itemsize
            + M * C * 4
        ),
    )

    out = pl.pallas_call(
        kernel,
        out_shape=jax.ShapeDtypeStruct((M, C), jnp.float32),
        grid_spec=pltpu.PrefetchScalarGridSpec(
            num_scalar_prefetch=0,
            grid=grid,
            in_specs=[
                pl.BlockSpec((tm, D), lambda i: (i, 0)),
                # Grid-invariant slab: constant index_map -> fetched once,
                # stays resident in VMEM for every M-tile.
                pl.BlockSpec((D, LANE), lambda i: (0, 0)),
            ],
            out_specs=pl.BlockSpec((tm, C), lambda i: (i, 0)),
        ),
        compiler_params=pltpu.CompilerParams(
            # Multi-step M grid shards across both TensorCores on v7x.
            dimension_semantics=("parallel",),
        ),
        cost_estimate=cost,
    )(q2, emb_slab)

    return out.reshape(B, Q, C)


def codebook_contrastive_head7_forward(
    query_features, class_embeddings, *, tile_m=2048, compute_dtype=jnp.bfloat16
):
    """Convenience wrapper matching the PyTorch module's forward signature."""
    C, P, _ = class_embeddings.shape
    emb_slab = prepare_class_embedding_slab(class_embeddings, compute_dtype)
    return codebook_head7_apply(
        query_features, emb_slab, C, P, tile_m=tile_m, compute_dtype=compute_dtype
    )


if __name__ == "__main__":
    # Small, module-consistent shapes.
    num_classes = 19
    prototypes_per_class = 5
    embedding_dim = 32          # small for the test; module default is 256
    batch_size = 2
    num_queries = 8

    key = jax.random.PRNGKey(0)
    k_emb, k_q = jax.random.split(key)

    # Matches nn.Parameter(torch.randn(C, P, D)) semantics (deterministic init).
    class_embeddings = jax.random.normal(
        k_emb,
        (num_classes + 1, prototypes_per_class, embedding_dim),
        dtype=jnp.float32,
    )
    query_features = jax.random.normal(
        k_q, (batch_size, num_queries, embedding_dim), dtype=jnp.float32
    )

    logits = codebook_contrastive_head7_forward(query_features, class_embeddings)
    logits = jax.block_until_ready(logits)

    # Pure-JAX reference with the same bf16 operand cast (f32 accumulation),
    # matching the kernel's MXU path (see performance-review correctness note).
    q_bf = query_features.astype(jnp.bfloat16).astype(jnp.float32)
    e_bf = class_embeddings.astype(jnp.bfloat16).astype(jnp.float32)
    ref = jnp.max(jnp.einsum("bqd,npd->bqnp", q_bf, e_bf), axis=-1)

    assert logits.shape == (batch_size, num_queries, num_classes + 1)
    assert jnp.allclose(logits, ref, atol=1e-2, rtol=1e-2), float(
        jnp.max(jnp.abs(logits - ref))
    )

    print("KERNEL_OK")
</pallas_src>

<mosaic_0001>
module attributes {stable_mosaic.version = 11 : i64} {
  func.func @_head_kernel(%arg0: i32, %arg1: memref<16x32xbf16, #tpu.memory_space<vmem>>, %arg2: memref<32x128xbf16, #tpu.memory_space<vmem>>, %arg3: memref<16x20xf32, #tpu.memory_space<vmem>>) attributes {dimension_semantics = [#tpu.dimension_semantics<parallel>], iteration_bounds = array<i64: 1>, scalar_prefetch = 0 : i64, scratch_operands = 0 : i64, tpu.core_type = #tpu.core_type<tc>, window_params = [{transform_indices = @transform_0, window_bounds = array<i64: 16, 32>}, {pipeline_mode = #tpu.pipeline_mode<synchronous>, transform_indices = @transform_1, window_bounds = array<i64: 32, 128>}, {transform_indices = @transform_2, window_bounds = array<i64: 16, 20>}]} {
    %c0 = arith.constant 0 : index
    %c0_0 = arith.constant 0 : index
    %0 = vector.load %arg1[%c0, %c0_0] : memref<16x32xbf16, #tpu.memory_space<vmem>>, vector<16x32xbf16>
    %c0_1 = arith.constant 0 : index
    %c0_2 = arith.constant 0 : index
    %1 = vector.load %arg2[%c0_1, %c0_2] : memref<32x128xbf16, #tpu.memory_space<vmem>>, vector<32x128xbf16>
    %cst = arith.constant dense<0.000000e+00> : vector<16x128xf32>
    %2 = tpu.matmul %0, %1, %cst {dimension_numbers = #tpu.dot_dimension_numbers<[1], [0], [0], [1], [0, 0, 1, 1], [], []>} : vector<16x32xbf16>, vector<32x128xbf16>, vector<16x128xf32> -> vector<16x128xf32>
    %3 = vector.extract_strided_slice %2 {offsets = [0, 0], sizes = [16, 20], strides = [1, 1]} : vector<16x128xf32> to vector<16x20xf32>
    %4 = vector.extract_strided_slice %2 {offsets = [0, 20], sizes = [16, 20], strides = [1, 1]} : vector<16x128xf32> to vector<16x20xf32>
    %5 = arith.maximumf %3, %4 : vector<16x20xf32>
    %6 = vector.extract_strided_slice %2 {offsets = [0, 40], sizes = [16, 20], strides = [1, 1]} : vector<16x128xf32> to vector<16x20xf32>
    %7 = arith.maximumf %5, %6 : vector<16x20xf32>
    %8 = vector.extract_strided_slice %2 {offsets = [0, 60], sizes = [16, 20], strides = [1, 1]} : vector<16x128xf32> to vector<16x20xf32>
    %9 = arith.maximumf %7, %8 : vector<16x20xf32>
    %10 = vector.extract_strided_slice %2 {offsets = [0, 80], sizes = [16, 20], strides = [1, 1]} : vector<16x128xf32> to vector<16x20xf32>
    %11 = arith.maximumf %9, %10 : vector<16x20xf32>
    %c0_3 = arith.constant 0 : index
    %c0_4 = arith.constant 0 : index
    %12 = vector.load %arg3[%c0_3, %c0_4] : memref<16x20xf32, #tpu.memory_space<vmem>>, vector<16x20xf32>
    tpu.vector_store %arg3[%c0_3, %c0_4], %11 {strides = array<i32>} : memref<16x20xf32, #tpu.memory_space<vmem>>, vector<16x20xf32>,
    return
  }
  func.func @transform_0(%arg0: i32) -> (i32, i32) {
    %c0_i32 = arith.constant 0 : i32
    %c0_i32_0 = arith.constant 0 : i32
    return %arg0, %c0_i32 : i32, i32
  }
  func.func @transform_1(%arg0: i32) -> (i32, i32) {
    %c0_i32 = arith.constant 0 : i32
    %c0_i32_0 = arith.constant 0 : i32
    %c0_i32_1 = arith.constant 0 : i32
    return %c0_i32, %c0_i32_0 : i32, i32
  }
  func.func @transform_2(%arg0: i32) -> (i32, i32) {
    %c0_i32 = arith.constant 0 : i32
    %c0_i32_0 = arith.constant 0 : i32
    return %arg0, %c0_i32 : i32, i32
  }
}

</mosaic_0001>

<bundles_post_ra>
// kernel: tpu_custom_call.1
= control target key start
LH: loop header
LB: loop body
LE: loop exit
PB: predicated region body
PF: predicated region fallthrough
CT: control target
= control target key end

     0   :  { %7 = vsyncpa [#allocation3], 0  ;;  %s298_s0 = inlined_call_operand.hbm [shape: bf16[16,32], index: 0, kind: input, shape index: {}]   ;;  %s299_s1 = inlined_call_operand.hbm [shape: bf16[32,128], index: 1, kind: input, shape index: {}]   ;;  %s300_s2 = inlined_call_operand.hbm [shape: f32[16,20], index: 2, kind: output, shape index: {}]  }
   0x1   :  { %8 = vsyncpa [#allocation6], 0 }
   0x2   :  { %9 = vsyncpa [#allocation4], 0  ;;  %s261_s9 = smov [#allocation2]  }
   0x3   :  { %s15_s10 = sshll.u32 %s261_s9, 4  ;;  %s16_s10 = int_to_ptr.vmem [resolvable:$true] %s15_s10 }
   0x4   :  { %s203_s11 = scalar_lea.vmem %s16_s10, 128  ;;  %p208_p1 = scmp.lt.s32.totalorder %s16_s10, %s16_s10 }
   0x5   :  { %p204_p0 = scmp.ne.s32.totalorder %s16_s10, %s203_s11  ;;  %p209_p2 = scmp.lt.s32.totalorder %s203_s11, %s203_s11 }
   0x7   :  { %p210_p3 = por %p209_p2, %p208_p1 }
   0x9   :  { %p211_p4 = pnand %p210_p3, %p204_p0 }
   0xb   :  { %214 = shalt.err (!%p211_p4)
}
   0xc   :  { %s262_s12 = smov 64   ;;  %s263_s13 = smov 4  }
   0xd   :  { %21 = dma.hbm_to_vmem [thread:$0]  %s298_s0, 128, %s16_s10, [#allocation3], %s262_s12, %s262_s12, %s263_s13  }
   0xe   :  { %s264_s16 = smov [#allocation5]  }
   0xf   :  { %s27_s17 = sshll.u32 %s264_s16, 4  ;;  %s28_s17 = int_to_ptr.vmem [resolvable:$true] %s27_s17 }
  0x10   :  { %s223_s18 = scalar_lea.vmem %s28_s17, 256  ;;  %p228_p6 = scmp.lt.s32.totalorder %s28_s17, %s28_s17 }
  0x11   :  { %p224_p5 = scmp.ne.s32.totalorder %s28_s17, %s223_s18  ;;  %p229_p7 = scmp.lt.s32.totalorder %s223_s18, %s223_s18 }
  0x13   :  { %p230_p8 = por %p229_p7, %p228_p6 }
  0x15   :  { %p231_p9 = pnand %p230_p8, %p224_p5 }
  0x17   :  { %234 = shalt.err (!%p231_p9)
}
  0x18   :  { %33 = dma.hbm_to_vmem [thread:$0]  %s299_s1, 256, %s28_s17, [#allocation6], %s262_s12, %s262_s12, %s263_s13  }
  0x19   :  { %255 = dma.done.wait [#allocation3], 128  }
  0x1a   :  { %256 = vsyncadd [#allocation3], 4294967168 }
  0x1b   :  { %257 = dma.done.wait [#allocation6], 256  }
  0x1c   :  { %258 = vsyncadd [#allocation6], 4294967040  ;;  %v265_v0 = vmov 0.0   ;;  %vm266_vm0 = vmmov 0   ;;  %v192_v1 = vld [vmem:[#allocation5 + $0x8] sm:$0xff]   ;;  %v193_v2 = vld [vmem:[#allocation5] sm:$0xff]  }
  0x1d   :  { %171 = vmatprep.subr.bf16.mxu0 %v265_v0  ;;  %175 = vmatprep.mubr.msk.bf16.mxu0 %vm266_vm0, %v265_v0  ;;  %v194_v3 = vld [vmem:[#allocation2] sm:$0xff]   ;;  %vm64_vm1 = vcmask 261120   ;;  %s267_s0 = smov 88   ;;  %s268_s1 = smov 108   ;;  %vm143_vm2 = vcmask 162816  }
  0x1e   :  { %172 = vmatpush3.bf16.msra.mxu0 %v192_v1  ;;  %s269_s21 = smov 68   ;;  %s270_s22 = smov 48  }
  0x1f   :  { %173 = vmatprep.subr.bf16.mxu0 %v265_v0  ;;  %s271_s23 = smov [#allocation7]  }
  0x20   :  { %s151_s24 = sshll.u32 %s271_s23, 4  ;;  %s152_s24 = int_to_ptr.vmem [resolvable:$true] %s151_s24 }
  0x21   :  { %s235_s25 = scalar_lea.vmem %s152_s24, 256  ;;  %p240_p11 = scmp.lt.s32.totalorder %s152_s24, %s152_s24 }
  0x22   :  { %174 = vmatpush3.bf16.msra.mxu0 %v193_v2  ;;  %p236_p10 = scmp.ne.s32.totalorder %s152_s24, %s235_s25  ;;  %p241_p12 = scmp.lt.s32.totalorder %s235_s25, %s235_s25 }
  0x24   :  { %p242_p13 = por %p241_p12, %p240_p11 }
  0x25   :  { %176 = vmatmul.mubr.msk.bf16.vlgmr.msra.gmra.mxu0 %vm64_vm1, %v194_v3 }
  0x26   :  { %p243_p0 = pnand %p242_p13, %p236_p10 }
  0xe5   :  { %v102_v4 = vpop.f32.mrf.mxu0 }
  0xe6   :  { %119 = vrot.lane.b32.xlu1 %v102_v4, %s267_s0  ;;  %111 = vrot.lane.b32.xlu0 %v102_v4, %s268_s1 }
  0xe7   :  { %v177_v5 = vpop.f32.mrf.mxu0 }
  0xe9   :  { %v105_v6 = vpop.f32.mrf.mxu0 }
  0xea   :  { %121 = vrot.lane.b32.xlu1 %v105_v6, %s267_s0  ;;  %113 = vrot.lane.b32.xlu0 %v105_v6, %s268_s1 }
  0xeb   :  { %v178_v7 = vpop.f32.mrf.mxu0 }
  0xee   :  { %129 = vrot.lane.b32.xlu1 %v105_v6, %s269_s21  ;;  %127 = vrot.lane.b32.xlu0 %v102_v4, %s269_s21 }
  0xf2   :  { %137 = vrot.lane.b32.xlu1 %v105_v6, %s270_s22  ;;  %135 = vrot.lane.b32.xlu0 %v102_v4, %s270_s22 }
 0x158   :  { %v120_v8 = vpop.permute.xlu1 %119  ;;  %v112_v9 = vpop.permute.xlu0 %111 }
 0x159   :  { %v117_v12 = vmax.f32 %v102_v4, %v112_v9 }
 0x15b   :  { %v125_v17 = vmax.f32 %v117_v12, %v120_v8 }
 0x15c   :  { %v122_v10 = vpop.permute.xlu1 %121  ;;  %v114_v11 = vpop.permute.xlu0 %113 }
 0x15d   :  { %v118_v13 = vmax.f32 %v105_v6, %v114_v11 }
 0x15f   :  { %v126_v14 = vmax.f32 %v118_v13, %v122_v10 }
 0x160   :  { %v130_v15 = vpop.permute.xlu1 %129  ;;  %v128_v16 = vpop.permute.xlu0 %127 }
 0x161   :  { %v134_v18 = vmax.f32 %v126_v14, %v130_v15  ;;  %v133_v19 = vmax.f32 %v125_v17, %v128_v16 }
 0x164   :  { %v138_v20 = vpop.permute.xlu1 %137  ;;  %v136_v21 = vpop.permute.xlu0 %135 }
 0x165   :  { %v142_v22 = vmax.f32 %v134_v18, %v138_v20  ;;  %v141_v23 = vmax.f32 %v133_v19, %v136_v21 }
 0x167   :  { %145 = vst.msk [vmem:[#allocation7 + $0x8] sm:$0xff] %vm143_vm2, %v142_v22  ;;  %144 = vst.msk [vmem:[#allocation7] sm:$0xff] %vm143_vm2, %v141_v23 }
 0x168   :  { %246 = shalt.err (!%p243_p0)
}
 0x169   :  { %s272_s26 = smov 128   ;;  %s273_s27 = smov 8  }
 0x16a   :  { %157 = dma.vmem_to_hbm [thread:$0]  %s152_s24, 256, %s300_s2, [#allocation4], %s272_s26, %s272_s26, %s273_s27  }
 0x16b   :  { %259 = dma.done.wait [#allocation4], 256  }
 0x16c   :  { %260 = vsyncadd [#allocation4], 4294967040 }
 0x16d   :  { %161 = vsyncpa [#allocation3], 1 }
 0x16e   :  { %162 = vsyncpa [#allocation6], 1 }
 0x16f   :  { %163 = vsyncpa [#allocation4], 1 }

</bundles_post_ra>
